<compile_context>
chip_gen: v6e
topology: v6e:2x2x1
jax: 0.10.0
libtpu: 0.0.40
codegen_flags: <defaults>
</compile_context>

<pallas_src>
import functools

import jax
import jax.numpy as jnp
from jax.experimental import pallas as pl
from jax.experimental.pallas import tpu as pltpu


def _round_up(x: int, m: int) -> int:
    return (x + m - 1) // m * m


def _vmem_capacity_bytes() -> int:
    """Physical per-TensorCore VMEM; conservative (v7x, 64 MiB) fallback."""
    try:
        cap = getattr(pltpu.get_tpu_info(), "vmem_capacity_bytes", None)
        if cap:
            return int(cap)
    except Exception:
        pass
    return 64 << 20


def _mf_embed_kernel(hashes_ref, weights_ref, table_ref, out_ref, *,
                     mxu_dtype, normalize, eps):
    """One (batch-tile i, entity-tile k) grid step.

    hashes_ref  : [F, Bt]   int32     (features on sublanes, batch on lanes)
    weights_ref : [F, Bt]   float32
    table_ref   : [Et, Dp]  mxu_dtype (entity tile k of the embedding table)
    out_ref     : [Bt, Dp]  float32   (resident across the k reduction axis)
    """
    k = pl.program_id(1)
    num_k = pl.num_programs(1)

    F, Bt = hashes_ref.shape
    Et = table_ref.shape[0]

    @pl.when(k == 0)
    def _init():
        out_ref[...] = jnp.zeros_like(out_ref)

    # Entity ids covered by this tile as an [Et, 1] column; the `==` below
    # broadcasts it against each [1, Bt] hash row, so no [Et, Bt] int32 ids
    # temp is ever materialized (removes a multi-MiB buffer + a pass per step).
    ids_col = jax.lax.broadcasted_iota(jnp.int32, (Et, 1), 0) + k * Et

    # Transposed scatter matrix S^T[e, b] = sum_j w[j, b] * (h[j, b] == e),
    # built in f32 on the VALU (safe on v5e: no bf16 VPU); only the MXU
    # operands below are cast to `mxu_dtype`.
    if F <= 8:
        # Small static F: trace-time unrolled, one [Et, Bt] temp live at a time.
        h_all = hashes_ref[...]                        # [F, Bt]
        w_all = weights_ref[...].astype(jnp.float32)   # [F, Bt]
        scat_t = jnp.zeros((Et, Bt), jnp.float32)
        for j in range(F):
            scat_t = scat_t + jnp.where(ids_col == h_all[j:j + 1, :],
                                        w_all[j:j + 1, :], jnp.float32(0.0))
    else:
        # Large F: a real loop bounds live ranges (an unrolled chain could keep
        # several multi-MiB [Et, Bt] temporaries alive -> VMEM spills on v7x).
        def add_feature(j, acc):
            hj = hashes_ref[pl.ds(j, 1), :]
            wj = weights_ref[pl.ds(j, 1), :].astype(jnp.float32)
            return acc + jnp.where(ids_col == hj, wj, jnp.float32(0.0))

        scat_t = jax.lax.fori_loop(0, F, add_feature,
                                   jnp.zeros((Et, Bt), jnp.float32))

    # EmbeddingBag(sum, per_sample_weights) for this entity tile on the MXU:
    # (S^T)^T @ T via a contracting-dim-0 dot_general (no explicit transpose),
    # f32 accumulation regardless of mxu_dtype.
    partial_embed = jax.lax.dot_general(
        scat_t.astype(mxu_dtype), table_ref[...].astype(mxu_dtype),
        dimension_numbers=(((0,), (0,)), ((), ())),
        preferred_element_type=jnp.float32)            # [Bt, Dp]
    out_ref[...] += partial_embed

    if normalize:
        @pl.when(k == num_k - 1)
        def _finalize():
            acc = out_ref[...]
            sumsq = jnp.sum(acc * acc, axis=-1, keepdims=True)
            # F.normalize: x / max(||x||, eps) == x * rsqrt(max(sumsq, eps^2));
            # padded (zero) columns contribute nothing to sumsq.
            inv = jax.lax.rsqrt(jnp.maximum(sumsq, jnp.float32(eps * eps)))
            out_ref[...] = acc * inv


def matrix_factorization_forward(feature_hashes, feature_weights, weight_table,
                                 *, normalize=True, mxu_dtype=jnp.bfloat16,
                                 max_entity_rows_per_tile=None):
    """feature_hashes [B,F] int, feature_weights [B,F] f32, weight_table [E,D] f32
    -> [B,D] f32 (L2-normalized rows if normalize=True).

    mxu_dtype: dtype used for the streamed table and the MXU matmul operands
    (accumulation is always f32). bfloat16 (default) is native on v5e/v6e/v7x
    MXUs and halves table HBM/VMEM bytes; pass jnp.float32 for bit-tight results.
    """
    B, F = feature_hashes.shape
    E, D = weight_table.shape
    table_dtype = jnp.dtype(mxu_dtype)
    tbytes = table_dtype.itemsize

    vmem_cap = _vmem_capacity_bytes()
    vmem_cap_safe = max(vmem_cap - (16 << 20), 32 << 20)   # headroom: 48 MiB on v7x

    # ---- tile / padding choices -------------------------------------------------
    Dp = _round_up(D, 128)               # lane-dense table blocks / output stores

    Bp8 = _round_up(B, 8)
    if Bp8 <= 128:
        Bt = Bp8                         # single tile (splitting below 128 lanes
                                         # would break the (8,128) block rule)
    elif Bp8 <= 1024:
        Bt = 128                         # >=2 lane-dense tiles -> megacore on v7x
    else:
        Bt = 512 if vmem_cap_safe >= (96 << 20) else 256   # bigger on v5e/v6e
    Bp = _round_up(B, Bt)

    # Entity tile: VMEM-budget-driven. Per entity row we hold the table tile
    # (double-buffered) plus ~4 live f32 [Et, Bt] scatter-build temporaries.
    Ep8 = _round_up(E, 8)
    per_row = 2 * Dp * tbytes + 4 * Bt * 4
    fixed = 2 * (2 * F * Bt * 4) + 2 * Bt * Dp * 4          # hash/weight blocks + out
    et_budget = max(int((vmem_cap_safe - fixed) / 1.4) - (4 << 20), 1 << 20)
    max_et = max((et_budget // per_row) // 8 * 8, 512)
    if max_entity_rows_per_tile is not None:
        max_et = min(max_et, _round_up(int(max_entity_rows_per_tile), 8))
    if Ep8 <= max_et:
        Et = Ep8            # whole table resident: block index constant in the
                            # grid -> the table is DMA'd from HBM exactly once.
    else:
        Et = max_et         # streamed tile-by-tile (re-streamed per batch tile;
                            # bf16 halves those bytes).
    Ep = _round_up(E, Et)

    # ---- lane-dense input layout + zero padding ----------------------------------
    hashes_t = feature_hashes.astype(jnp.int32).T        # [F, B]  batch on lanes
    weights_t = feature_weights.astype(jnp.float32).T    # [F, B]
    if Bp != B:
        hashes_t = jnp.pad(hashes_t, ((0, 0), (0, Bp - B)))   # idx 0, weight 0
        weights_t = jnp.pad(weights_t, ((0, 0), (0, Bp - B)))
    # TODO(synk): in a real model, cast/pad the table once at parameter-init time
    # (it is a static weight) instead of per call.
    table = weight_table.astype(table_dtype)
    if Ep != E or Dp != D:
        table = jnp.pad(table, ((0, Ep - E), (0, Dp - D)))

    grid = (Bp // Bt, Ep // Et)
    nb, nk = grid

    kernel = functools.partial(_mf_embed_kernel, mxu_dtype=table_dtype,
                               normalize=normalize, eps=1e-12)

    # VMEM budget: double-buffered streamed blocks + resident output block +
    # ~4 live [Et, Bt] f32 scatter temporaries; clamp under the physical cap.
    vmem_est = (2 * Et * Dp * tbytes            # table block (double-buffered)
                + 2 * (2 * F * Bt * 4)          # hashes + weights blocks
                + 2 * Bt * Dp * 4               # output block
                + 4 * Et * Bt * 4)              # scatter-build live set
    vmem_limit = int(min(max(int(1.4 * vmem_est) + (2 << 20), 8 << 20),
                         vmem_cap_safe))

    cost = pl.CostEstimate(
        flops=int(2 * Bp * Ep * Dp + 3 * F * Bp * Ep),
        transcendentals=int(Bp),
        bytes_accessed=int(Ep * Dp * tbytes * (1 if nk == 1 else nb)
                           + 2 * F * Bp * 4
                           + Bp * Dp * 4),
    )

    out_padded = pl.pallas_call(
        kernel,
        out_shape=jax.ShapeDtypeStruct((Bp, Dp), jnp.float32),
        grid_spec=pltpu.PrefetchScalarGridSpec(
            num_scalar_prefetch=0,
            grid=grid,
            in_specs=[
                pl.BlockSpec((F, Bt), lambda i, k: (0, i)),    # hashes  [F, Bt]
                pl.BlockSpec((F, Bt), lambda i, k: (0, i)),    # weights [F, Bt]
                pl.BlockSpec((Et, Dp), lambda i, k: (k, 0)),   # table   [Et, Dp]
            ],
            out_specs=pl.BlockSpec((Bt, Dp), lambda i, k: (i, 0)),  # accumulator
        ),
        compiler_params=pltpu.CompilerParams(
            dimension_semantics=("parallel", "arbitrary"),
            vmem_limit_bytes=vmem_limit,
        ),
        cost_estimate=cost,
    )(hashes_t, weights_t, table)

    return out_padded[:B, :D]


def _reference(feature_hashes, feature_weights, weight_table):
    gathered = weight_table[feature_hashes]                          # [B, F, D]
    embed = jnp.sum(gathered * feature_weights[..., None], axis=1)   # [B, D]
    norm = jnp.sqrt(jnp.sum(embed * embed, axis=-1, keepdims=True))
    return embed / jnp.maximum(norm, 1e-12)


if __name__ == "__main__":
    def run_and_check(B, F, E, D, key, *, mxu_dtype, atol, rtol, **kw):
        k_h, k_w, k_t = jax.random.split(key, 3)
        feature_hashes = jax.random.randint(k_h, (B, F), 0, E, dtype=jnp.int32)
        feature_weights = jax.random.normal(k_w, (B, F), dtype=jnp.float32)
        # Deterministic synthetic init of the embedder's weight table.
        weight_table = jax.random.normal(k_t, (E, D), dtype=jnp.float32) * 0.1

        out = matrix_factorization_forward(feature_hashes, feature_weights,
                                           weight_table, mxu_dtype=mxu_dtype, **kw)
        out = jax.block_until_ready(out)

        ref = _reference(feature_hashes, feature_weights, weight_table)
        assert out.shape == (B, D)
        assert jnp.allclose(out, ref, atol=atol, rtol=rtol), \
            f"max abs err {float(jnp.max(jnp.abs(out - ref)))}"

    key = jax.random.PRNGKey(0)
    k1, k2, k3, k4 = jax.random.split(key, 4)

    # Small shape implied by the module: batch=8, 4 hashed features/row,
    # 128-entry embedding table, 32-dim embedding.  f32 -> bit-tight check.
    run_and_check(B=8, F=4, E=128, D=32, key=k1,
                  mxu_dtype=jnp.float32, atol=1e-5, rtol=1e-5)
    # Multi batch-tile path with a VMEM-resident (single-tile) table.
    run_and_check(B=272, F=5, E=3000, D=40, key=k2,
                  mxu_dtype=jnp.float32, atol=1e-5, rtol=1e-5)
    # Same shape with the bf16 default (MXU/table in bf16, f32 accumulation).
    run_and_check(B=272, F=5, E=3000, D=40, key=k3,
                  mxu_dtype=jnp.bfloat16, atol=2e-2, rtol=2e-2)
    # Force the streamed / multi-entity-tile accumulation path (k reduction).
    run_and_check(B=272, F=5, E=3000, D=40, key=k4,
                  mxu_dtype=jnp.float32, atol=1e-5, rtol=1e-5,
                  max_entity_rows_per_tile=1024)

    print("KERNEL_OK")
</pallas_src>

<mosaic_0001>
module attributes {stable_mosaic.version = 11 : i64} {
  func.func @_mf_embed_kernel(%arg0: i32, %arg1: i32, %arg2: memref<4x8xi32, #tpu.memory_space<vmem>>, %arg3: memref<4x8xf32, #tpu.memory_space<vmem>>, %arg4: memref<128x128xf32, #tpu.memory_space<vmem>>, %arg5: memref<8x128xf32, #tpu.memory_space<vmem>>) attributes {dimension_semantics = [#tpu.dimension_semantics<parallel>, #tpu.dimension_semantics<arbitrary>], iteration_bounds = array<i64: 1, 1>, scalar_prefetch = 0 : i64, scratch_operands = 0 : i64, tpu.core_type = #tpu.core_type<tc>, window_params = [{transform_indices = @transform_0, window_bounds = array<i64: 4, 8>}, {transform_indices = @transform_1, window_bounds = array<i64: 4, 8>}, {transform_indices = @transform_2, window_bounds = array<i64: 128, 128>}, {transform_indices = @transform_3, window_bounds = array<i64: 8, 128>}]} {
    %c0_i32 = arith.constant 0 : i32
    %0 = arith.cmpi eq, %arg1, %c0_i32 : i32
    %1 = arith.extui %0 : i1 to i32
    %c0_i32_0 = arith.constant 0 : i32
    %2 = arith.cmpi ne, %1, %c0_i32_0 : i32
    scf.if %2 {
      %cst_17 = arith.constant 0.000000e+00 : f32
      %58 = vector.broadcast %cst_17 : f32 to vector<8x128xf32>
      %c0_18 = arith.constant 0 : index
      %c0_19 = arith.constant 0 : index
      %59 = vector.load %arg5[%c0_18, %c0_19] : memref<8x128xf32, #tpu.memory_space<vmem>>, vector<8x128xf32>
      tpu.vector_store %arg5[%c0_18, %c0_19], %58 {strides = array<i32>} : memref<8x128xf32, #tpu.memory_space<vmem>>, vector<8x128xf32>,
    } else {
    }
    %3 = tpu.iota {dimensions = array<i32: 0>} : vector<128x1xi32>
    %c128_i32 = arith.constant 128 : i32
    %4 = arith.muli %arg1, %c128_i32 : i32
    %5 = vector.broadcast %4 : i32 to vector<128x1xi32>
    %6 = arith.addi %3, %5 : vector<128x1xi32>
    %c0 = arith.constant 0 : index
    %c0_1 = arith.constant 0 : index
    %7 = vector.load %arg2[%c0, %c0_1] : memref<4x8xi32, #tpu.memory_space<vmem>>, vector<4x8xi32>
    %c0_2 = arith.constant 0 : index
    %c0_3 = arith.constant 0 : index
    %8 = vector.load %arg3[%c0_2, %c0_3] : memref<4x8xf32, #tpu.memory_space<vmem>>, vector<4x8xf32>
    %cst = arith.constant 0.000000e+00 : f32
    %9 = vector.broadcast %cst : f32 to vector<128x8xf32>
    %10 = vector.extract_strided_slice %7 {offsets = [0, 0], sizes = [1, 8], strides = [1, 1]} : vector<4x8xi32> to vector<1x8xi32>
    %11 = vector.broadcast %6 : vector<128x1xi32> to vector<128x8xi32>
    %12 = vector.broadcast %10 : vector<1x8xi32> to vector<128x8xi32>
    %13 = arith.cmpi eq, %11, %12 : vector<128x8xi32>
    %14 = vector.extract_strided_slice %8 {offsets = [0, 0], sizes = [1, 8], strides = [1, 1]} : vector<4x8xf32> to vector<1x8xf32>
    %cst_4 = arith.constant 0.000000e+00 : f32
    %15 = vector.shape_cast %14 : vector<1x8xf32> to vector<1x8xf32>
    %16 = vector.broadcast %15 : vector<1x8xf32> to vector<128x8xf32>
    %17 = vector.broadcast %cst_4 : f32 to vector<128x8xf32>
    %18 = arith.select %13, %16, %17 : vector<128x8xi1>, vector<128x8xf32>
    %19 = arith.addf %9, %18 : vector<128x8xf32>
    %20 = vector.extract_strided_slice %7 {offsets = [1, 0], sizes = [1, 8], strides = [1, 1]} : vector<4x8xi32> to vector<1x8xi32>
    %21 = vector.broadcast %6 : vector<128x1xi32> to vector<128x8xi32>
    %22 = vector.broadcast %20 : vector<1x8xi32> to vector<128x8xi32>
    %23 = arith.cmpi eq, %21, %22 : vector<128x8xi32>
    %24 = vector.extract_strided_slice %8 {offsets = [1, 0], sizes = [1, 8], strides = [1, 1]} : vector<4x8xf32> to vector<1x8xf32>
    %cst_5 = arith.constant 0.000000e+00 : f32
    %25 = vector.shape_cast %24 : vector<1x8xf32> to vector<1x8xf32>
    %26 = vector.broadcast %25 : vector<1x8xf32> to vector<128x8xf32>
    %27 = vector.broadcast %cst_5 : f32 to vector<128x8xf32>
    %28 = arith.select %23, %26, %27 : vector<128x8xi1>, vector<128x8xf32>
    %29 = arith.addf %19, %28 : vector<128x8xf32>
    %30 = vector.extract_strided_slice %7 {offsets = [2, 0], sizes = [1, 8], strides = [1, 1]} : vector<4x8xi32> to vector<1x8xi32>
    %31 = vector.broadcast %6 : vector<128x1xi32> to vector<128x8xi32>
    %32 = vector.broadcast %30 : vector<1x8xi32> to vector<128x8xi32>
    %33 = arith.cmpi eq, %31, %32 : vector<128x8xi32>
    %34 = vector.extract_strided_slice %8 {offsets = [2, 0], sizes = [1, 8], strides = [1, 1]} : vector<4x8xf32> to vector<1x8xf32>
    %cst_6 = arith.constant 0.000000e+00 : f32
    %35 = vector.shape_cast %34 : vector<1x8xf32> to vector<1x8xf32>
    %36 = vector.broadcast %35 : vector<1x8xf32> to vector<128x8xf32>
    %37 = vector.broadcast %cst_6 : f32 to vector<128x8xf32>
    %38 = arith.select %33, %36, %37 : vector<128x8xi1>, vector<128x8xf32>
    %39 = arith.addf %29, %38 : vector<128x8xf32>
    %40 = vector.extract_strided_slice %7 {offsets = [3, 0], sizes = [1, 8], strides = [1, 1]} : vector<4x8xi32> to vector<1x8xi32>
    %41 = vector.broadcast %6 : vector<128x1xi32> to vector<128x8xi32>
    %42 = vector.broadcast %40 : vector<1x8xi32> to vector<128x8xi32>
    %43 = arith.cmpi eq, %41, %42 : vector<128x8xi32>
    %44 = vector.extract_strided_slice %8 {offsets = [3, 0], sizes = [1, 8], strides = [1, 1]} : vector<4x8xf32> to vector<1x8xf32>
    %cst_7 = arith.constant 0.000000e+00 : f32
    %45 = vector.shape_cast %44 : vector<1x8xf32> to vector<1x8xf32>
    %46 = vector.broadcast %45 : vector<1x8xf32> to vector<128x8xf32>
    %47 = vector.broadcast %cst_7 : f32 to vector<128x8xf32>
    %48 = arith.select %43, %46, %47 : vector<128x8xi1>, vector<128x8xf32>
    %49 = arith.addf %39, %48 : vector<128x8xf32>
    %c0_8 = arith.constant 0 : index
    %c0_9 = arith.constant 0 : index
    %50 = vector.load %arg4[%c0_8, %c0_9] : memref<128x128xf32, #tpu.memory_space<vmem>>, vector<128x128xf32>
    %cst_10 = arith.constant dense<0.000000e+00> : vector<8x128xf32>
    %51 = tpu.matmul %49, %50, %cst_10 {dimension_numbers = #tpu.dot_dimension_numbers<[0], [0], [1], [1], [0, 1, 1, 1], [], []>} : vector<128x8xf32>, vector<128x128xf32>, vector<8x128xf32> -> vector<8x128xf32>
    %c0_11 = arith.constant 0 : index
    %c0_12 = arith.constant 0 : index
    %52 = vector.load %arg5[%c0_11, %c0_12] : memref<8x128xf32, #tpu.memory_space<vmem>>, vector<8x128xf32>
    %53 = arith.addf %52, %51 : vector<8x128xf32>
    %c0_13 = arith.constant 0 : index
    %c0_14 = arith.constant 0 : index
    %54 = vector.load %arg5[%c0_13, %c0_14] : memref<8x128xf32, #tpu.memory_space<vmem>>, vector<8x128xf32>
    tpu.vector_store %arg5[%c0_13, %c0_14], %53 {strides = array<i32>} : memref<8x128xf32, #tpu.memory_space<vmem>>, vector<8x128xf32>,
    %c0_i32_15 = arith.constant 0 : i32
    %55 = arith.cmpi eq, %arg1, %c0_i32_15 : i32
    %56 = arith.extui %55 : i1 to i32
    %c0_i32_16 = arith.constant 0 : i32
    %57 = arith.cmpi ne, %56, %c0_i32_16 : i32
    scf.if %57 {
      %c0_17 = arith.constant 0 : index
      %c0_18 = arith.constant 0 : index
      %58 = vector.load %arg5[%c0_17, %c0_18] : memref<8x128xf32, #tpu.memory_space<vmem>>, vector<8x128xf32>
      %59 = arith.mulf %58, %58 : vector<8x128xf32>
      %cst_19 = arith.constant dense<0.000000e+00> : vector<8xf32>
      %60 = vector.multi_reduction <add>, %59, %cst_19 [1] : vector<8x128xf32> to vector<8xf32>
      %61 = vector.shape_cast %60 : vector<8xf32> to vector<8x1xf32>
      %cst_20 = arith.constant 1.000000e-24 : f32
      %62 = vector.broadcast %cst_20 : f32 to vector<8x1xf32>
      %63 = arith.maximumf %61, %62 : vector<8x1xf32>
      %64 = math.rsqrt %63 : vector<8x1xf32>
      %65 = vector.broadcast %64 : vector<8x1xf32> to vector<8x128xf32>
      %66 = arith.mulf %58, %65 : vector<8x128xf32>
      %c0_21 = arith.constant 0 : index
      %c0_22 = arith.constant 0 : index
      %67 = vector.load %arg5[%c0_21, %c0_22] : memref<8x128xf32, #tpu.memory_space<vmem>>, vector<8x128xf32>
      tpu.vector_store %arg5[%c0_21, %c0_22], %66 {strides = array<i32>} : memref<8x128xf32, #tpu.memory_space<vmem>>, vector<8x128xf32>,
    } else {
    }
    return
  }
  func.func @transform_0(%arg0: i32, %arg1: i32) -> (i32, i32) {
    %c0_i32 = arith.constant 0 : i32
    %c0_i32_0 = arith.constant 0 : i32
    return %c0_i32, %arg0 : i32, i32
  }
  func.func @transform_1(%arg0: i32, %arg1: i32) -> (i32, i32) {
    %c0_i32 = arith.constant 0 : i32
    %c0_i32_0 = arith.constant 0 : i32
    return %c0_i32, %arg0 : i32, i32
  }
  func.func @transform_2(%arg0: i32, %arg1: i32) -> (i32, i32) {
    %c0_i32 = arith.constant 0 : i32
    %c0_i32_0 = arith.constant 0 : i32
    return %arg1, %c0_i32 : i32, i32
  }
  func.func @transform_3(%arg0: i32, %arg1: i32) -> (i32, i32) {
    %c0_i32 = arith.constant 0 : i32
    %c0_i32_0 = arith.constant 0 : i32
    return %arg0, %c0_i32 : i32, i32
  }
}

</mosaic_0001>

<bundles_post_ra>
// kernel: tpu_custom_call.1
= control target key start
LH: loop header
LB: loop body
LE: loop exit
PB: predicated region body
PF: predicated region fallthrough
CT: control target
= control target key end

     0   :  { %8 = vsyncpa [#allocation3], 0  ;;  %s870_s0 = inlined_call_operand.hbm [shape: s32[4,8], index: 0, kind: input, shape index: {}]   ;;  %s871_s1 = inlined_call_operand.hbm [shape: f32[4,8], index: 1, kind: input, shape index: {}]   ;;  %s872_s2 = inlined_call_operand.hbm [shape: f32[128,128], index: 2, kind: input, shape index: {}]   ;;  %s873_s3 = inlined_call_operand.hbm [shape: f32[8,128], index: 3, kind: output, shape index: {}]  }
   0x1   :  { %9 = vsyncpa [#allocation6], 0 }
   0x2   :  { %10 = vsyncpa [#allocation4], 0  ;;  %s614_s12 = smov [#allocation5]   ;;  %s615_s14 = smov [#allocation2]  }
   0x3   :  { %s27_s13 = sshll.u32 %s614_s12, 4  ;;  %s17_s15 = sshll.u32 %s615_s14, 4  ;;  %s28_s13 = int_to_ptr.vmem [resolvable:$true] %s27_s13  ;;  %s18_s15 = int_to_ptr.vmem [resolvable:$true] %s17_s15 }
   0x4   :  { %s536_s16 = scalar_lea.vmem %s28_s13, 64  ;;  %p541_p1 = scmp.lt.s32.totalorder %s28_s13, %s28_s13 }
   0x5   :  { %p537_p0 = scmp.ne.s32.totalorder %s28_s13, %s536_s16  ;;  %p542_p2 = scmp.lt.s32.totalorder %s536_s16, %s536_s16 }
   0x7   :  { %p543_p3 = por %p542_p2, %p541_p1 }
   0x9   :  { %p544_p4 = pnand %p543_p3, %p537_p0 }
   0xb   :  { %547 = shalt.err (!%p544_p4)
}
   0xc   :  { %30 = dma.hbm_to_vmem [thread:$0]  %s871_s1, 64, %s28_s13, [#allocation6]  }
   0xd   :  { %s556_s19 = scalar_lea.vmem %s18_s15, 64  ;;  %p561_p6 = scmp.lt.s32.totalorder %s18_s15, %s18_s15 }
   0xe   :  { %p557_p5 = scmp.ne.s32.totalorder %s18_s15, %s556_s19  ;;  %p562_p7 = scmp.lt.s32.totalorder %s556_s19, %s556_s19 }
  0x10   :  { %p563_p8 = por %p562_p7, %p561_p6 }
  0x12   :  { %p564_p9 = pnand %p563_p8, %p557_p5 }
  0x14   :  { %567 = shalt.err (!%p564_p9)
}
  0x15   :  { %20 = dma.hbm_to_vmem [thread:$0]  %s870_s0, 64, %s18_s15, [#allocation3]  }
  0x16   :  { %s616_s22 = smov [#allocation7]  }
  0x17   :  { %s36_s23 = sshll.u32 %s616_s22, 4  ;;  %s37_s23 = int_to_ptr.vmem [resolvable:$true] %s36_s23 }
  0x18   :  { %s576_s24 = scalar_lea.vmem %s37_s23, 2048  ;;  %p581_p11 = scmp.lt.s32.totalorder %s37_s23, %s37_s23 }
  0x19   :  { %p577_p10 = scmp.ne.s32.totalorder %s37_s23, %s576_s24  ;;  %p582_p12 = scmp.lt.s32.totalorder %s576_s24, %s576_s24 }
  0x1b   :  { %p583_p13 = por %p582_p12, %p581_p11 }
  0x1d   :  { %p584_p0 = pnand %p583_p13, %p577_p10 }
  0x1f   :  { %587 = shalt.err (!%p584_p0)
}
  0x20   :  { %s617_s1 = smov 128   ;;  %s618_s25 = smov 8  }
  0x21   :  { %42 = dma.hbm_to_vmem [thread:$0]  %s872_s2, 2048, %s37_s23, [#allocation6], %s617_s1, %s617_s1, %s618_s25  }
  0x22   :  { %608 = dma.done.wait [#allocation3], 64  }
  0x23   :  { %609 = vsyncadd [#allocation3], 4294967232 }
  0x24   :  { %610 = dma.done.wait [#allocation6], 2112  }
  0x25   :  { %611 = vsyncadd [#allocation6], 4294965184  ;;  %v57_v0 = vlaneseq  ;;  %v619_v1 = vmov 0.0   ;;  %vm620_vm0 = vmmov 0   ;;  %v92_v10 = vld [vmem:[#allocation2] sm:$0xf] }
  0x26   :  { %483 = vmatprep.subr.mxu0 %v619_v1  ;;  %515 = vmatprep.mubr.msk.f32.mxu0 %vm620_vm0, %v619_v1  ;;  %v93_v11 = vld [vmem:[#allocation5] sm:$0xf]  ;;  %v332_v19 = vld [vmem:[#allocation7 + $0x70] sm:$0xff]  ;;  %v331_v24 = vld [vmem:[#allocation7 + $0x68] sm:$0xff]  ;;  %s621_s0 = smov [#allocation8]  }
  0x27   :  { %v653_v2 = vshrl.u32 %v57_v0, 7  ;;  %v333_v18 = vld [vmem:[#allocation7 + $0x78] sm:$0xff]  ;;  %v330_v31 = vld [vmem:[#allocation7 + $0x60] sm:$0xff]  ;;  %v328_v43 = vld [vmem:[#allocation7 + $0x50] sm:$0xff]  ;;  %s456_s2 = sshll.u32 %s621_s0, 4  ;;  %s457_s2 = int_to_ptr.vmem [resolvable:$true] %s456_s2 }
  0x28   :  { %484 = vmatpush3.msra.mxu0 %v333_v18  ;;  %v329_v37 = vld [vmem:[#allocation7 + $0x58] sm:$0xff]  ;;  %v327_v49 = vld [vmem:[#allocation7 + $0x48] sm:$0xff]  ;;  %v326_v53 = vld [vmem:[#allocation7 + $0x40] sm:$0xff]  ;;  %s588_s28 = scalar_lea.vmem %s457_s2, 128  ;;  %p593_p2 = scmp.lt.s32.totalorder %s457_s2, %s457_s2 }
  0x29   :  { %v96_v3 = vsub.s32 0, %v653_v2  ;;  %v152_v4 = vsub.s32 1, %v653_v2  ;;  %v208_v5 = vsub.s32 2, %v653_v2  ;;  %v264_v6 = vsub.s32 3, %v653_v2  ;;  %485 = vmatprep.subr.mxu0 %v619_v1  ;;  %v325_v61 = vld [vmem:[#allocation7 + $0x38] sm:$0xff]  ;;  %p589_p1 = scmp.ne.s32.totalorder %s457_s2, %s588_s28  ;;  %p594_p3 = scmp.lt.s32.totalorder %s588_s28, %s588_s28 }
  0x2a   :  { %v59_v7 = vadd.s32 8, %v653_v2  ;;  %v60_v8 = vadd.s32 16, %v653_v2  ;;  %v662_v9 = vadd.s32 24, %v653_v2  ;;  %v665_v12 = vadd.s32 32, %v653_v2  ;;  %486 = vmatpush3.msra.mxu0 %v332_v19  ;;  %v322_v19 = vld [vmem:[#allocation7 + $0x20] sm:$0xff] }
  0x2b   :  { %v668_v13 = vadd.s32 40, %v653_v2  ;;  %v670_v14 = vrot.slane %v92_v10, %v96_v3  ;;  %v672_v15 = vrot.slane %v93_v11, %v96_v3  ;;  %v674_v16 = vrot.slane %v92_v10, %v152_v4  ;;  %487 = vmatprep.subr.mxu0 %v619_v1  ;;  %p595_p4 = por %p594_p3, %p593_p2 }
  0x2c   :  { %v676_v17 = vrot.slane %v93_v11, %v152_v4  ;;  %v678_v20 = vrot.slane %v92_v10, %v208_v5  ;;  %v680_v21 = vrot.slane %v93_v11, %v208_v5  ;;  %v682_v22 = vrot.slane %v92_v10, %v264_v6  ;;  %488 = vmatpush3.msra.mxu0 %v331_v24  ;;  %v324_v4 = vld [vmem:[#allocation7 + $0x30] sm:$0xff] }
  0x2d   :  { %v684_v23 = vrot.slane %v93_v11, %v264_v6  ;;  %vm98_vm1 = vcmp.eq.s32.totalorder %v653_v2, %v670_v14  ;;  %vm154_vm2 = vcmp.eq.s32.totalorder %v653_v2, %v674_v16  ;;  %vm99_vm3 = vcmp.eq.s32.totalorder %v59_v7, %v670_v14  ;;  %489 = vmatprep.subr.mxu0 %v619_v1  ;;  %p596_p5 = pnand %p595_p4, %p589_p1 }
  0x2e   :  { %vm155_vm4 = vcmp.eq.s32.totalorder %v59_v7, %v674_v16  ;;  %v118_v25 = vsel %vm98_vm1, %v672_v15, 0.0  ;;  %v174_v26 = vsel %vm154_vm2, %v676_v17, 0.0  ;;  %vm210_vm5 = vcmp.eq.s32.totalorder %v653_v2, %v678_v20  ;;  %490 = vmatpush3.msra.mxu0 %v330_v31 }
  0x2f   :  { %vm266_vm6 = vcmp.eq.s32.totalorder %v653_v2, %v682_v22  ;;  %v190_v27 = vadd.f32 %v174_v26, %v118_v25  ;;  %v230_v28 = vsel %vm210_vm5, %v680_v21, 0.0  ;;  %v119_v30 = vsel %vm99_vm3, %v672_v15, 0.0  ;;  %491 = vmatprep.subr.mxu0 %v619_v1 }
  0x30   :  { %v286_v29 = vsel %vm266_vm6, %v684_v23, 0.0  ;;  %v175_v32 = vsel %vm155_vm4, %v676_v17, 0.0  ;;  %vm211_vm7 = vcmp.eq.s32.totalorder %v59_v7, %v678_v20  ;;  %vm267_vm8 = vcmp.eq.s32.totalorder %v59_v7, %v682_v22  ;;  %492 = vmatpush3.msra.mxu0 %v329_v37  ;;  %v319_v37 = vld [vmem:[#allocation7 + $0x8] sm:$0xff] }
  0x31   :  { %vm100_vm9 = vcmp.eq.s32.totalorder %v60_v8, %v670_v14  ;;  %v246_v33 = vadd.f32 %v230_v28, %v190_v27  ;;  %v191_v34 = vadd.f32 %v175_v32, %v119_v30  ;;  %v231_v35 = vsel %vm211_vm7, %v680_v21, 0.0  ;;  %493 = vmatprep.subr.mxu0 %v619_v1  ;;  %v321_v27 = vld [vmem:[#allocation7 + $0x18] sm:$0xff]  ;;  %v320_v32 = vld [vmem:[#allocation7 + $0x10] sm:$0xff] }
  0x32   :  { %v287_v36 = vsel %vm267_vm8, %v684_v23, 0.0  ;;  %v120_v38 = vsel %vm100_vm9, %v672_v15, 0.0  ;;  %vm156_vm10 = vcmp.eq.s32.totalorder %v60_v8, %v674_v16  ;;  %vm212_vm11 = vcmp.eq.s32.totalorder %v60_v8, %v678_v20  ;;  %494 = vmatpush3.msra.mxu0 %v328_v43 }
  0x33   :  { %vm268_vm12 = vcmp.eq.s32.totalorder %v60_v8, %v682_v22  ;;  %v302_v39 = vadd.f32 %v286_v29, %v246_v33  ;;  %v247_v40 = vadd.f32 %v231_v35, %v191_v34  ;;  %v176_v41 = vsel %vm156_vm10, %v676_v17, 0.0  ;;  %495 = vmatprep.subr.mxu0 %v619_v1 }
  0x34   :  { %v232_v42 = vsel %vm212_vm11, %v680_v21, 0.0  ;;  %v192_v44 = vadd.f32 %v176_v41, %v120_v38  ;;  %v288_v45 = vsel %vm268_vm12, %v684_v23, 0.0  ;;  %vm101_vm13 = vcmp.eq.s32.totalorder %v662_v9, %v670_v14  ;;  %496 = vmatpush3.msra.mxu0 %v327_v49 }
  0x35   :  { %vm157_vm14 = vcmp.eq.s32.totalorder %v662_v9, %v674_v16  ;;  %334 = vxpose.xlu0.b32.start [1/16] (narrow) %v302_v39, 8  ;;  %v303_v46 = vadd.f32 %v287_v36, %v247_v40  ;;  %v121_v47 = vsel %vm101_vm13, %v672_v15, 0.0  ;;  %vm213_vm15 = vcmp.eq.s32.totalorder %v662_v9, %v678_v20  ;;  %497 = vmatprep.subr.mxu0 %v619_v1 }
  0x36   :  { %v177_v48 = vsel %vm157_vm14, %v676_v17, 0.0  ;;  %v248_v50 = vadd.f32 %v232_v42, %v192_v44  ;;  %v233_v52 = vsel %vm213_vm15, %v680_v21, 0.0  ;;  %vm269_vm0 = vcmp.eq.s32.totalorder %v662_v9, %v682_v22  ;;  %498 = vmatpush3.msra.mxu0 %v326_v53  ;;  %v323_v9 = vld [vmem:[#allocation7 + $0x28] sm:$0xff]  ;;  %v318_v42 = vld [vmem:[#allocation7] sm:$0xff] }
  0x37   :  { %v193_v51 = vadd.f32 %v177_v48, %v121_v47  ;;  %vm102_vm1 = vcmp.eq.s32.totalorder %v665_v12, %v670_v14  ;;  %vm158_vm2 = vcmp.eq.s32.totalorder %v665_v12, %v674_v16  ;;  %vm214_vm3 = vcmp.eq.s32.totalorder %v665_v12, %v678_v20  ;;  %499 = vmatprep.subr.mxu0 %v619_v1 }
  0x38   :  { %v122_v55 = vsel %vm102_vm1, %v672_v15, 0.0  ;;  %v178_v56 = vsel %vm158_vm2, %v676_v17, 0.0  ;;  %v740_v57 = vadd.s32 48, %v653_v2  ;;  %v304_v58 = vadd.f32 %v288_v45, %v248_v50  ;;  %500 = vmatpush3.msra.mxu0 %v325_v61 }
  0x39   :  { %v249_v54 = vadd.f32 %v233_v52, %v193_v51  ;;  %335 = vxpose.xlu0.b32.cont [2/16] (narrow) %v303_v46, 8  ;;  %v289_v59 = vsel %vm269_vm0, %v684_v23, 0.0  ;;  %v194_v60 = vadd.f32 %v178_v56, %v122_v55  ;;  %vm103_vm4 = vcmp.eq.s32.totalorder %v668_v13, %v670_v14  ;;  %501 = vmatprep.subr.mxu0 %v619_v1 }
  0x3a   :  { %v234_v62 = vsel %vm214_vm3, %v680_v21, 0.0  ;;  %vm270_vm5 = vcmp.eq.s32.totalorder %v665_v12, %v682_v22  ;;  %v123_v63 = vsel %vm103_vm4, %v672_v15, 0.0  ;;  %vm159_vm6 = vcmp.eq.s32.totalorder %v668_v13, %v674_v16  ;;  %502 = vmatpush3.msra.mxu0 %v324_v4 }
  0x3b   :  { %v179_v0 = vsel %vm159_vm6, %v676_v17, 0.0  ;;  %vm215_vm7 = vcmp.eq.s32.totalorder %v668_v13, %v678_v20  ;;  %v756_v3 = vadd.s32 56, %v653_v2  ;;  %v305_v5 = vadd.f32 %v289_v59, %v249_v54  ;;  %503 = vmatprep.subr.mxu0 %v619_v1 }
  0x3c   :  { %vm104_vm8 = vcmp.eq.s32.totalorder %v740_v57, %v670_v14  ;;  %v250_v6 = vadd.f32 %v234_v62, %v194_v60  ;;  %v290_v7 = vsel %vm270_vm5, %v684_v23, 0.0  ;;  %v195_v8 = vadd.f32 %v179_v0, %v123_v63  ;;  %504 = vmatpush3.msra.mxu0 %v323_v9 }
  0x3d   :  { %336 = vxpose.xlu0.b32.cont [3/16] (narrow) %v304_v58, 8  ;;  %vm160_vm9 = vcmp.eq.s32.totalorder %v740_v57, %v674_v16  ;;  %v235_v10 = vsel %vm215_vm7, %v680_v21, 0.0  ;;  %vm271_vm10 = vcmp.eq.s32.totalorder %v668_v13, %v682_v22  ;;  %v124_v11 = vsel %vm104_vm8, %v672_v15, 0.0  ;;  %505 = vmatprep.subr.mxu0 %v619_v1 }
  0x3e   :  { %v180_v12 = vsel %vm160_vm9, %v676_v17, 0.0  ;;  %vm216_vm11 = vcmp.eq.s32.totalorder %v740_v57, %v678_v20  ;;  %vm105_vm12 = vcmp.eq.s32.totalorder %v756_v3, %v670_v14  ;;  %vm161_vm13 = vcmp.eq.s32.totalorder %v756_v3, %v674_v16  ;;  %506 = vmatpush3.msra.mxu0 %v322_v19 }
  0x3f   :  { %v66_v18 = vadd.s32 64, %v653_v2  ;;  %v306_v13 = vadd.f32 %v290_v7, %v250_v6  ;;  %v251_v24 = vadd.f32 %v235_v10, %v195_v8  ;;  %v291_v25 = vsel %vm271_vm10, %v684_v23, 0.0  ;;  %507 = vmatprep.subr.mxu0 %v619_v1 }
  0x40   :  { %v196_v26 = vadd.f32 %v180_v12, %v124_v11  ;;  %v236_v28 = vsel %vm216_vm11, %v680_v21, 0.0  ;;  %vm272_vm14 = vcmp.eq.s32.totalorder %v740_v57, %v682_v22  ;;  %v125_v29 = vsel %vm105_vm12, %v672_v15, 0.0  ;;  %508 = vmatpush3.msra.mxu0 %v321_v27 }
  0x41   :  { %337 = vxpose.xlu0.b32.cont [4/16] (narrow) %v305_v5, 8  ;;  %v181_v30 = vsel %vm161_vm13, %v676_v17, 0.0  ;;  %vm217_vm15 = vcmp.eq.s32.totalorder %v756_v3, %v678_v20  ;;  %vm106_vm0 = vcmp.eq.s32.totalorder %v66_v18, %v670_v14  ;;  %vm162_vm1 = vcmp.eq.s32.totalorder %v66_v18, %v674_v16  ;;  %509 = vmatprep.subr.mxu0 %v619_v1 }
  0x42   :  { %v67_v31 = vadd.s32 72, %v653_v2  ;;  %v307_v33 = vadd.f32 %v291_v25, %v251_v24  ;;  %v252_v34 = vadd.f32 %v236_v28, %v196_v26  ;;  %v292_v35 = vsel %vm272_vm14, %v684_v23, 0.0  ;;  %510 = vmatpush3.msra.mxu0 %v320_v32 }
  0x43   :  { %v197_v36 = vadd.f32 %v181_v30, %v125_v29  ;;  %v237_v38 = vsel %vm217_vm15, %v680_v21, 0.0  ;;  %vm273_vm2 = vcmp.eq.s32.totalorder %v756_v3, %v682_v22  ;;  %v126_v39 = vsel %vm106_vm0, %v672_v15, 0.0  ;;  %511 = vmatprep.subr.mxu0 %v619_v1 }
  0x44   :  { %v182_v40 = vsel %vm162_vm1, %v676_v17, 0.0  ;;  %vm218_vm3 = vcmp.eq.s32.totalorder %v66_v18, %v678_v20  ;;  %vm107_vm4 = vcmp.eq.s32.totalorder %v67_v31, %v670_v14  ;;  %vm163_vm5 = vcmp.eq.s32.totalorder %v67_v31, %v674_v16  ;;  %512 = vmatpush3.msra.mxu0 %v319_v37 }
  0x45   :  { %338 = vxpose.xlu0.b32.cont [5/16] (narrow) %v306_v13, 8  ;;  %v68_v41 = vadd.s32 80, %v653_v2  ;;  %v308_v43 = vadd.f32 %v292_v35, %v252_v34  ;;  %v253_v44 = vadd.f32 %v237_v38, %v197_v36  ;;  %v293_v45 = vsel %vm273_vm2, %v684_v23, 0.0  ;;  %513 = vmatprep.subr.mxu0 %v619_v1 }
  0x46   :  { %v198_v46 = vadd.f32 %v182_v40, %v126_v39  ;;  %v238_v47 = vsel %vm218_vm3, %v680_v21, 0.0  ;;  %vm274_vm6 = vcmp.eq.s32.totalorder %v66_v18, %v682_v22  ;;  %v127_v48 = vsel %vm107_vm4, %v672_v15, 0.0  ;;  %514 = vmatpush3.msra.mxu0 %v318_v42 }
  0x47   :  { %v183_v49 = vsel %vm163_vm5, %v676_v17, 0.0  ;;  %vm219_vm7 = vcmp.eq.s32.totalorder %v67_v31, %v678_v20  ;;  %vm108_vm8 = vcmp.eq.s32.totalorder %v68_v41, %v670_v14  ;;  %vm164_vm9 = vcmp.eq.s32.totalorder %v68_v41, %v674_v16 }
  0x48   :  { %v69_v50 = vadd.s32 88, %v653_v2  ;;  %v309_v51 = vadd.f32 %v293_v45, %v253_v44  ;;  %v254_v1 = vadd.f32 %v238_v47, %v198_v46  ;;  %v294_v52 = vsel %vm274_vm6, %v684_v23, 0.0 }
  0x49   :  { %339 = vxpose.xlu0.b32.cont [6/16] (narrow) %v307_v33, 8  ;;  %v199_v53 = vadd.f32 %v183_v49, %v127_v48  ;;  %v239_v54 = vsel %vm219_vm7, %v680_v21, 0.0  ;;  %vm275_vm10 = vcmp.eq.s32.totalorder %v67_v31, %v682_v22  ;;  %v128_v55 = vsel %vm108_vm8, %v672_v15, 0.0 }
  0x4a   :  { %v184_v56 = vsel %vm164_vm9, %v676_v17, 0.0  ;;  %vm220_vm11 = vcmp.eq.s32.totalorder %v68_v41, %v678_v20  ;;  %vm109_vm12 = vcmp.eq.s32.totalorder %v69_v50, %v670_v14  ;;  %vm165_vm13 = vcmp.eq.s32.totalorder %v69_v50, %v674_v16 }
  0x4b   :  { %v70_v57 = vadd.s32 96, %v653_v2  ;;  %v310_v58 = vadd.f32 %v294_v52, %v254_v1  ;;  %v255_v59 = vadd.f32 %v239_v54, %v199_v53  ;;  %v295_v60 = vsel %vm275_vm10, %v684_v23, 0.0 }
  0x4c   :  { %v200_v61 = vadd.f32 %v184_v56, %v128_v55  ;;  %v240_v62 = vsel %vm220_vm11, %v680_v21, 0.0  ;;  %vm276_vm14 = vcmp.eq.s32.totalorder %v68_v41, %v682_v22  ;;  %v129_v63 = vsel %vm109_vm12, %v672_v15, 0.0 }
  0x4d   :  { %340 = vxpose.xlu0.b32.cont [7/16] (narrow) %v308_v43, 8  ;;  %v185_v0 = vsel %vm165_vm13, %v676_v17, 0.0  ;;  %vm221_vm15 = vcmp.eq.s32.totalorder %v69_v50, %v678_v20  ;;  %vm110_vm0 = vcmp.eq.s32.totalorder %v70_v57, %v670_v14  ;;  %vm166_vm1 = vcmp.eq.s32.totalorder %v70_v57, %v674_v16 }
  0x4e   :  { %v71_v3 = vadd.s32 104, %v653_v2  ;;  %v311_v4 = vadd.f32 %v295_v60, %v255_v59  ;;  %v256_v5 = vadd.f32 %v240_v62, %v200_v61  ;;  %v296_v6 = vsel %vm276_vm14, %v684_v23, 0.0 }
  0x4f   :  { %v201_v7 = vadd.f32 %v185_v0, %v129_v63  ;;  %v241_v8 = vsel %vm221_vm15, %v680_v21, 0.0  ;;  %v130_v9 = vsel %vm110_vm0, %v672_v15, 0.0  ;;  %v186_v10 = vsel %vm166_vm1, %v676_v17, 0.0 }
  0x50   :  { %v72_v11 = vadd.s32 112, %v653_v2  ;;  %vm277_vm2 = vcmp.eq.s32.totalorder %v69_v50, %v682_v22  ;;  %vm222_vm3 = vcmp.eq.s32.totalorder %v70_v57, %v678_v20  ;;  %vm111_vm4 = vcmp.eq.s32.totalorder %v71_v3, %v670_v14 }
  0x51   :  { %341 = vxpose.xlu0.b32.cont [8/16] (narrow) %v309_v51, 8  ;;  %vm167_vm5 = vcmp.eq.s32.totalorder %v71_v3, %v674_v16  ;;  %v312_v12 = vadd.f32 %v296_v6, %v256_v5  ;;  %v257_v18 = vadd.f32 %v241_v8, %v201_v7  ;;  %v202_v19 = vadd.f32 %v186_v10, %v130_v9 }
  0x52   :  { %v73_v13 = vadd.s32 120, %v653_v2  ;;  %v297_v24 = vsel %vm277_vm2, %v684_v23, 0.0  ;;  %v242_v25 = vsel %vm222_vm3, %v680_v21, 0.0  ;;  %v131_v26 = vsel %vm111_vm4, %v672_v15, 0.0 }
  0x53   :  { %v187_v27 = vsel %vm167_vm5, %v676_v17, 0.0  ;;  %vm278_vm6 = vcmp.eq.s32.totalorder %v70_v57, %v682_v22  ;;  %vm223_vm7 = vcmp.eq.s32.totalorder %v71_v3, %v678_v20  ;;  %vm112_vm8 = vcmp.eq.s32.totalorder %v72_v11, %v670_v14 }
  0x54   :  { %vm168_vm9 = vcmp.eq.s32.totalorder %v72_v11, %v674_v16  ;;  %v313_v28 = vadd.f32 %v297_v24, %v257_v18  ;;  %v258_v29 = vadd.f32 %v242_v25, %v202_v19  ;;  %v203_v2 = vadd.f32 %v187_v27, %v131_v26 }
  0x55   :  { %342 = vxpose.xlu0.b32.cont [9/16] (narrow) %v310_v58, 8  ;;  %v298_v30 = vsel %vm278_vm6, %v684_v23, 0.0  ;;  %v243_v31 = vsel %vm223_vm7, %v680_v21, 0.0  ;;  %v132_v32 = vsel %vm112_vm8, %v672_v15, 0.0  ;;  %v188_v33 = vsel %vm168_vm9, %v676_v17, 0.0 }
  0x56   :  { %vm279_vm10 = vcmp.eq.s32.totalorder %v71_v3, %v682_v22  ;;  %vm224_vm11 = vcmp.eq.s32.totalorder %v72_v11, %v678_v20  ;;  %vm113_vm12 = vcmp.eq.s32.totalorder %v73_v13, %v670_v14  ;;  %vm169_vm13 = vcmp.eq.s32.totalorder %v73_v13, %v674_v16 }
  0x57   :  { %v314_v34 = vadd.f32 %v298_v30, %v258_v29  ;;  %v259_v35 = vadd.f32 %v243_v31, %v203_v2  ;;  %v204_v36 = vadd.f32 %v188_v33, %v132_v32  ;;  %v299_v37 = vsel %vm279_vm10, %v684_v23, 0.0 }
  0x58   :  { %v244_v38 = vsel %vm224_vm11, %v680_v21, 0.0  ;;  %v133_v39 = vsel %vm113_vm12, %v672_v15, 0.0  ;;  %v189_v40 = vsel %vm169_vm13, %v676_v17, 0.0  ;;  %vm280_vm14 = vcmp.eq.s32.totalorder %v72_v11, %v682_v22 }
  0x59   :  { %343 = vxpose.xlu0.b32.cont [10/16] (narrow) %v311_v4, 8  ;;  %vm225_vm15 = vcmp.eq.s32.totalorder %v73_v13, %v678_v20  ;;  %v315_v14 = vadd.f32 %v299_v37, %v259_v35  ;;  %v260_v41 = vadd.f32 %v244_v38, %v204_v36  ;;  %v205_v16 = vadd.f32 %v189_v40, %v133_v39 }
  0x5a   :  { %v300_v42 = vsel %vm280_vm14, %v684_v23, 0.0  ;;  %v245_v43 = vsel %vm225_vm15, %v680_v21, 0.0  ;;  %vm281_vm0 = vcmp.eq.s32.totalorder %v73_v13, %v682_v22 }
  0x5b   :  { %v316_v44 = vadd.f32 %v300_v42, %v260_v41  ;;  %v261_v45 = vadd.f32 %v245_v43, %v205_v16  ;;  %v301_v15 = vsel %vm281_vm0, %v684_v23, 0.0 }
  0x5d   :  { %344 = vxpose.xlu0.b32.cont [11/16] (narrow) %v312_v12, 8  ;;  %v317_v17 = vadd.f32 %v301_v15, %v261_v45 }
  0x61   :  { %345 = vxpose.xlu0.b32.cont [12/16] (narrow) %v313_v28, 8 }
  0x65   :  { %346 = vxpose.xlu0.b32.cont [13/16] (narrow) %v314_v34, 8 }
  0x69   :  { %347 = vxpose.xlu0.b32.cont [14/16] (narrow) %v315_v14, 8 }
  0x6d   :  { %348 = vxpose.xlu0.b32.cont [15/16] (narrow) %v316_v44, 8 }
  0x71   :  { %349 = vxpose.xlu0.b32.end [16/16] (narrow) %v317_v17, 8 }
  0xb1   :  { %v350_v46 = vpop.trf.xlu0 }
  0xb2   :  { %516 = vmatmul.mubr.f32.vlgmr.msra.gmra.mxu0 %v350_v46 }
 0x172   :  { %v432_v20 = vpop.f32.mrf.mxu0 }
 0x173   :  { %v443_v48 = vmul.f32 %v432_v20, %v432_v20 }
 0x174   :  { %v517_v47 = vpop.f32.mrf.mxu0 }
 0x175   :  { %444 = vadd.xlane.f32.xlu1 %v443_v48 }
 0x1fe   :  { %v445_v49 = vpop.xlane.xlu1 %444 }
 0x1ff   :  { %v446_v50 = vmax.f32 %v445_v49, 1e-24 }
 0x201   :  { %526 = vrsqrt.f32 %v446_v50 }
 0x20e   :  { %v527_v21 = vpop.eup %526 }
 0x20f   :  { %v448_v22 = vmul.f32 %v527_v21, %v432_v20 }
 0x211   :  { %449 = vst [vmem:[#allocation8] sm:$0xff] %v448_v22 }
 0x212   :  { %599 = shalt.err (!%p596_p5)
}
 0x213   :  { %459 = dma.vmem_to_hbm [thread:$0]  %s457_s2, 128, %s873_s3, [#allocation4]  }
 0x214   :  { %612 = dma.done.wait [#allocation4], 128  }
 0x215   :  { %613 = vsyncadd [#allocation4], 4294967168 }
 0x216   :  { %463 = vsyncpa [#allocation3], 1 }
 0x217   :  { %464 = vsyncpa [#allocation6], 1 }
 0x218   :  { %465 = vsyncpa [#allocation4], 1 }

</bundles_post_ra>
